<compile_context>
chip_gen: v7x
topology: tpu7x:2x2x1
jax: 0.10.0
libtpu: 0.0.40
codegen_flags: <defaults>
</compile_context>

<pallas_src>
import functools
import math

import jax
import jax.numpy as jnp
from jax.experimental import pallas as pl
from jax.experimental.pallas import tpu as pltpu


# ----------------------------------------------------------------------------
# tile-size selection (generation aware)
# ----------------------------------------------------------------------------

@functools.lru_cache(maxsize=1)
def _tile_caps():
    """(tm_cap, tn_cap, tk_cap) derived from VMEM capacity.

    v5e/v6e have 128 MiB VMEM, v7x only 64 MiB -> halve row/col caps there.
    """
    try:
        info = pltpu.get_tpu_info()
        vmem_bytes = getattr(info, "vmem_capacity_bytes", 64 * 1024 * 1024)
    except Exception:
        vmem_bytes = 64 * 1024 * 1024
    if vmem_bytes >= 100 * 1024 * 1024:      # v5e / v6e (128 MiB)
        return 512, 256, 2048
    return 256, 256, 1024                     # v7x (64 MiB)


def _pick_tile(dim, cap, floor):
    """Largest power-of-two tile <= cap (>= floor) that divides dim; else the full dim."""
    if dim <= cap:
        return dim
    t = cap
    while t >= floor:
        if dim % t == 0:
            return t
        t //= 2
    return dim


@functools.lru_cache(maxsize=1)
def _erf_supported():
    """Probe whether erf lowers through Mosaic; fall back to tanh-GELU otherwise."""
    def k(x_ref, o_ref):
        o_ref[...] = jax.scipy.special.erf(x_ref[...])
    try:
        out = pl.pallas_call(
            k, out_shape=jax.ShapeDtypeStruct((8, 128), jnp.float32)
        )(jnp.zeros((8, 128), jnp.float32))
        jax.block_until_ready(out)
        return True
    except Exception:
        return False


# ----------------------------------------------------------------------------
# fused linear:  [LayerNorm] -> x @ W -> +bias -> [GELU] -> [+residual]
# ----------------------------------------------------------------------------

def _linear_kernel(*refs, activation, fuse_ln, fuse_res, eps, use_erf):
    it = iter(refs)
    x_ref = next(it)
    w_ref = next(it)
    b_ref = next(it)
    g_ref = bb_ref = r_ref = None
    if fuse_ln:
        g_ref = next(it)
        bb_ref = next(it)
    if fuse_res:
        r_ref = next(it)
    o_ref = next(it)
    acc_ref = next(it)

    k = pl.program_id(2)
    nk = pl.num_programs(2)

    @pl.when(k == 0)
    def _():
        acc_ref[...] = jnp.zeros_like(acc_ref)

    x = x_ref[...].astype(jnp.float32)
    if fuse_ln:
        # LayerNorm fused into the matmul prologue (requires the full K row in this block).
        mean = jnp.mean(x, axis=-1, keepdims=True)
        xc = x - mean
        var = jnp.mean(xc * xc, axis=-1, keepdims=True)
        x = xc * jax.lax.rsqrt(var + eps) * g_ref[...] + bb_ref[...]

    # bf16 MXU operands, f32 accumulation.
    acc_ref[...] += jnp.dot(x.astype(jnp.bfloat16), w_ref[...],
                            preferred_element_type=jnp.float32)

    @pl.when(k == nk - 1)
    def _():
        y = acc_ref[...] + b_ref[...]
        if activation == "gelu":
            if use_erf:
                # exact GELU, matches torch.nn.GELU(approximate='none')
                y = 0.5 * y * (1.0 + jax.scipy.special.erf(y * 0.7071067811865476))
            else:
                # TODO(synk): erf did not lower on this Mosaic build; tanh-approx GELU used.
                y = 0.5 * y * (1.0 + jnp.tanh(0.7978845608028654 * (y + 0.044715 * y * y * y)))
        if fuse_res:
            y = y + r_ref[...]
        o_ref[...] = y.astype(o_ref.dtype)


def fused_linear(x, w, b, *, ln=None, residual=None, activation=None):
    """x:(M,K) f32, w:(K,N) bf16, b:(N,) f32.  Optional fused LN (prologue),
    GELU and residual add (epilogue).  Returns (M,N) f32."""
    M, K = x.shape
    K2, N = w.shape
    assert K == K2

    tm_cap, tn_cap, tk_cap = _tile_caps()
    tm = _pick_tile(M, tm_cap, 8)
    tn = _pick_tile(N, tn_cap, 128)
    tk = K if ln is not None else _pick_tile(K, tk_cap, 128)
    assert K % tk == 0 and M % tm == 0 and N % tn == 0
    grid = (M // tm, N // tn, K // tk)

    fuse_ln = ln is not None
    fuse_res = residual is not None

    in_specs = [
        pl.BlockSpec((tm, tk), lambda i, j, k: (i, k)),
        pl.BlockSpec((tk, tn), lambda i, j, k: (k, j)),
        pl.BlockSpec((1, tn), lambda i, j, k: (0, j)),
    ]
    args = [x, w, b.reshape(1, N)]
    if fuse_ln:
        g, beta = ln
        in_specs += [pl.BlockSpec((1, tk), lambda i, j, k: (0, k)),
                     pl.BlockSpec((1, tk), lambda i, j, k: (0, k))]
        args += [g.reshape(1, K), beta.reshape(1, K)]
    if fuse_res:
        in_specs.append(pl.BlockSpec((tm, tn), lambda i, j, k: (i, j)))
        args.append(residual)

    kernel = functools.partial(
        _linear_kernel, activation=activation, fuse_ln=fuse_ln, fuse_res=fuse_res,
        eps=1e-6, use_erf=_erf_supported() if activation == "gelu" else True)

    return pl.pallas_call(
        kernel,
        out_shape=jax.ShapeDtypeStruct((M, N), jnp.float32),
        grid_spec=pltpu.PrefetchScalarGridSpec(
            num_scalar_prefetch=0,
            grid=grid,
            in_specs=in_specs,
            out_specs=pl.BlockSpec((tm, tn), lambda i, j, k: (i, j)),
            scratch_shapes=[pltpu.VMEM((tm, tn), jnp.float32)],
        ),
        compiler_params=pltpu.CompilerParams(
            dimension_semantics=("parallel", "parallel", "arbitrary"),
            vmem_limit_bytes=32 * 1024 * 1024),
    )(*args)


# ----------------------------------------------------------------------------
# positional-embedding add (pos stays (1,S,D) in HBM, never broadcast to (B,S,D))
# ----------------------------------------------------------------------------

def _add_pos_kernel(x_ref, pos_ref, o_ref):
    o_ref[...] = x_ref[...] + pos_ref[...]


def add_pos(x, pos):
    B, S, D = x.shape
    return pl.pallas_call(
        _add_pos_kernel,
        out_shape=jax.ShapeDtypeStruct((B, S, D), jnp.float32),
        grid=(B,),
        in_specs=[pl.BlockSpec((1, S, D), lambda b: (b, 0, 0)),
                  pl.BlockSpec((1, S, D), lambda b: (0, 0, 0))],
        out_specs=pl.BlockSpec((1, S, D), lambda b: (b, 0, 0)),
        compiler_params=pltpu.CompilerParams(dimension_semantics=("parallel",)),
    )(x, pos)


# ----------------------------------------------------------------------------
# multi-head self-attention fused with the output projection + residual:
# one batch per grid step, heads sliced in-kernel, per-head (P_h V_h) @ W_out[h]
# accumulated directly -> no head concat, no extra HBM intermediate.
# ----------------------------------------------------------------------------

def _attn_kernel(qkv_ref, wo_ref, bo_ref, res_ref, o_ref, *, heads, scale):
    qkv = qkv_ref[0]                                     # (S, 3D) f32
    S, threeD = qkv.shape
    D = threeD // 3
    dh = D // heads

    acc = jnp.zeros((S, D), jnp.float32)
    for h in range(heads):                               # static unroll over heads
        qh = (qkv[:, h * dh:(h + 1) * dh] * scale).astype(jnp.bfloat16)
        kh = qkv[:, D + h * dh:D + (h + 1) * dh].astype(jnp.bfloat16)
        vh = qkv[:, 2 * D + h * dh:2 * D + (h + 1) * dh].astype(jnp.bfloat16)
        s = jnp.dot(qh, kh.T, preferred_element_type=jnp.float32)       # (S,S) f32
        s = s - jnp.max(s, axis=-1, keepdims=True)
        p = jnp.exp(s)
        p = p * pl.reciprocal(jnp.sum(p, axis=-1, keepdims=True), approx=True)
        ctx = jnp.dot(p.astype(jnp.bfloat16), vh,
                      preferred_element_type=jnp.float32)               # (S,dh) f32
        # fused out-projection slice for this head (sublane-aligned static index)
        acc = acc + jnp.dot(ctx.astype(jnp.bfloat16), wo_ref[h],
                            preferred_element_type=jnp.float32)         # (S,D) f32
    # lane-dense (S, D) store, residual + out-proj bias fused in the epilogue
    o_ref[0] = (acc + bo_ref[...] + res_ref[0]).astype(o_ref.dtype)


def attention_block(qkv, w_out_h, b_out, residual, *, heads, scale):
    # TODO(synk): for real ViT (S=197) pad S to a multiple of 8 with key masking to avoid
    # masked partial tiles on the SxS score matrix.
    B, S, threeD = qkv.shape
    D = threeD // 3
    dh = D // heads
    return pl.pallas_call(
        functools.partial(_attn_kernel, heads=heads, scale=scale),
        out_shape=jax.ShapeDtypeStruct((B, S, D), jnp.float32),
        grid=(B,),
        in_specs=[pl.BlockSpec((1, S, threeD), lambda b: (b, 0, 0)),
                  pl.BlockSpec((heads, dh, D), lambda b: (0, 0, 0)),
                  pl.BlockSpec((1, D), lambda b: (0, 0)),
                  pl.BlockSpec((1, S, D), lambda b: (b, 0, 0))],
        out_specs=pl.BlockSpec((1, S, D), lambda b: (b, 0, 0)),
        compiler_params=pltpu.CompilerParams(
            dimension_semantics=("parallel",),
            vmem_limit_bytes=32 * 1024 * 1024),
    )(qkv, w_out_h, b_out.reshape(1, D), residual)


# ----------------------------------------------------------------------------
# standalone LayerNorm (only used for the final class-token LN — tiny)
# ----------------------------------------------------------------------------

def _layernorm_kernel(x_ref, g_ref, b_ref, o_ref, *, eps):
    x = x_ref[...]
    mean = jnp.mean(x, axis=-1, keepdims=True)
    xc = x - mean
    var = jnp.mean(xc * xc, axis=-1, keepdims=True)
    o_ref[...] = xc * jax.lax.rsqrt(var + eps) * g_ref[...] + b_ref[...]


def layernorm(x, g, b, eps=1e-6):
    m, d = x.shape
    return pl.pallas_call(
        functools.partial(_layernorm_kernel, eps=eps),
        out_shape=jax.ShapeDtypeStruct((m, d), jnp.float32),
    )(x, g.reshape(1, d), b.reshape(1, d))


# ----------------------------------------------------------------------------
# parameter preparation: one-time transpose into kernel layout + bf16 weights
# ----------------------------------------------------------------------------

def prepare_params(params, cfg):
    D, C, p, heads = cfg["hidden"], cfg["channels"], cfg["patch"], cfg["heads"]
    dh = D // heads
    wdt = jnp.bfloat16
    prep = {
        "w_patch": params["conv_w"].reshape(D, C * p * p).T.astype(wdt),   # (C*p*p, D)
        "b_patch": params["conv_b"],
        "cls": params["cls"],            # (1, 1, D)
        "pos": params["pos"],            # (1, S, D)
        "ln_g": params["ln_g"], "ln_b": params["ln_b"],
        "layers": [],
    }
    for lp in params["layers"]:
        prep["layers"].append({
            "ln1_g": lp["ln1_g"], "ln1_b": lp["ln1_b"],
            "w_qkv": lp["in_w"].T.astype(wdt),                       # (D, 3D)
            "b_qkv": lp["in_b"],
            "w_out_h": lp["out_w"].T.reshape(heads, dh, D).astype(wdt),  # per-head (dh, D)
            "b_out": lp["out_b"],
            "ln2_g": lp["ln2_g"], "ln2_b": lp["ln2_b"],
            "w_fc1": lp["fc1_w"].T.astype(wdt),                      # (D, mlp)
            "b_fc1": lp["fc1_b"],
            "w_fc2": lp["fc2_w"].T.astype(wdt),                      # (mlp, D)
            "b_fc2": lp["fc2_b"],
        })
    return prep


# ----------------------------------------------------------------------------
# ViT forward (glue is cheap JAX reshapes/concat; all math inside Pallas kernels)
# ----------------------------------------------------------------------------

def vit_forward(x, prep, cfg):
    B, C, H, W = x.shape
    p, D, heads = cfg["patch"], cfg["hidden"], cfg["heads"]
    dh = D // heads
    nH, nW = H // p, W // p
    n_patch = nH * nW
    S = n_patch + 1

    # Conv2d(C, D, kernel=p, stride=p) == flatten non-overlapping patches + matmul.
    patches = (x.reshape(B, C, nH, p, nW, p)
                 .transpose(0, 2, 4, 1, 3, 5)
                 .reshape(B * n_patch, C * p * p))
    tok = fused_linear(patches, prep["w_patch"], prep["b_patch"])      # (B*n_patch, D)

    # prepend class token (pure data movement) + positional embedding (Pallas add)
    cls_b = jnp.broadcast_to(prep["cls"].astype(jnp.float32), (B, 1, D))
    h = add_pos(jnp.concatenate([cls_b, tok.reshape(B, n_patch, D)], axis=1),
                prep["pos"])                                           # (B, S, D)
    hf = h.reshape(B * S, D)
    # encoder dropout: eval mode -> identity

    for lp in prep["layers"]:
        # --- self-attention block: LN (fused) -> QKV -> MHSA + out-proj + residual (one kernel)
        qkv = fused_linear(hf, lp["w_qkv"], lp["b_qkv"],
                           ln=(lp["ln1_g"], lp["ln1_b"]))              # (B*S, 3D)
        hf = attention_block(qkv.reshape(B, S, 3 * D), lp["w_out_h"], lp["b_out"],
                             hf.reshape(B, S, D),
                             heads=heads, scale=1.0 / math.sqrt(dh)).reshape(B * S, D)

        # --- MLP block: LN (fused) -> fc1 + GELU -> fc2 (+residual fused)
        y = fused_linear(hf, lp["w_fc1"], lp["b_fc1"],
                         ln=(lp["ln2_g"], lp["ln2_b"]), activation="gelu")
        hf = fused_linear(y, lp["w_fc2"], lp["b_fc2"], residual=hf)

    # final LN only on the class token (the only row the module returns); heads == Identity
    cls_tok = hf.reshape(B, S, D)[:, 0]                                # (B, D)
    return layernorm(cls_tok, prep["ln_g"], prep["ln_b"])


# ----------------------------------------------------------------------------
# Deterministic synthetic parameters (shapes follow torchvision ViT, scaled down)
# ----------------------------------------------------------------------------

def init_params(key, cfg):
    D, C, p = cfg["hidden"], cfg["channels"], cfg["patch"]
    mlp, L = cfg["mlp"], cfg["layers"]
    n_patch = (cfg["image"] // p) ** 2
    S = n_patch + 1

    keys = iter(jax.random.split(key, 3 + 4 * L))
    nrm = lambda k, shape, std=0.02: (std * jax.random.normal(k, shape)).astype(jnp.float32)

    params = {
        "conv_w": nrm(next(keys), (D, C, p, p)),
        "conv_b": jnp.zeros((D,), jnp.float32),
        "cls":    nrm(next(keys), (1, 1, D)),
        "pos":    nrm(next(keys), (1, S, D)),
        "ln_g":   jnp.ones((D,), jnp.float32),
        "ln_b":   jnp.zeros((D,), jnp.float32),
        "layers": [],
    }
    for _ in range(L):
        params["layers"].append({
            "ln1_g": jnp.ones((D,), jnp.float32),
            "ln1_b": jnp.zeros((D,), jnp.float32),
            "in_w":  nrm(next(keys), (3 * D, D)),       # MHA in_proj_weight (3D, D)
            "in_b":  jnp.zeros((3 * D,), jnp.float32),
            "out_w": nrm(next(keys), (D, D)),           # MHA out_proj
            "out_b": jnp.zeros((D,), jnp.float32),
            "ln2_g": jnp.ones((D,), jnp.float32),
            "ln2_b": jnp.zeros((D,), jnp.float32),
            "fc1_w": nrm(next(keys), (mlp, D)),
            "fc1_b": jnp.zeros((mlp,), jnp.float32),
            "fc2_w": nrm(next(keys), (D, mlp)),
            "fc2_b": jnp.zeros((D,), jnp.float32),
        })
    return params


if __name__ == "__main__":
    # Small, ViT-consistent config: 16x16 image, 8x8 patches -> 4 patches + cls = 5 tokens.
    cfg = dict(image=16, patch=8, channels=3, hidden=64, heads=4, mlp=128, layers=2)

    key = jax.random.PRNGKey(0)
    k_x, k_p = jax.random.split(key)
    x = jax.random.normal(k_x, (2, cfg["channels"], cfg["image"], cfg["image"]),
                          dtype=jnp.float32)
    params = init_params(k_p, cfg)
    prep = prepare_params(params, cfg)          # one-time layout transpose + bf16 cast

    feats = vit_forward(x, prep, cfg)
    feats = jax.block_until_ready(feats)
    assert feats.shape == (2, cfg["hidden"]), feats.shape
    assert jnp.all(jnp.isfinite(feats))
    print("KERNEL_OK")
</pallas_src>

<mosaic_0001>
module attributes {stable_mosaic.version = 11 : i64} {
  func.func @_linear_kernel(%arg0: i32, %arg1: i32, %arg2: i32, %arg3: memref<8x192xf32, #tpu.memory_space<vmem>>, %arg4: memref<192x64xbf16, #tpu.memory_space<vmem>>, %arg5: memref<1x64xf32, #tpu.memory_space<vmem>>, %arg6: memref<8x64xf32, #tpu.memory_space<vmem>>, %arg7: memref<8x64xf32, #tpu.memory_space<vmem>>) attributes {dimension_semantics = [#tpu.dimension_semantics<parallel>, #tpu.dimension_semantics<parallel>, #tpu.dimension_semantics<arbitrary>], iteration_bounds = array<i64: 1, 1, 1>, scalar_prefetch = 0 : i64, scratch_operands = 1 : i64, tpu.core_type = #tpu.core_type<tc>, window_params = [{transform_indices = @transform_0, window_bounds = array<i64: 8, 192>}, {transform_indices = @transform_1, window_bounds = array<i64: 192, 64>}, {transform_indices = @transform_2, window_bounds = array<i64: 1, 64>}, {transform_indices = @transform_3, window_bounds = array<i64: 8, 64>}]} {
    %c0_i32 = arith.constant 0 : i32
    %0 = arith.cmpi eq, %arg2, %c0_i32 : i32
    %1 = arith.extui %0 : i1 to i32
    %c0_i32_0 = arith.constant 0 : i32
    %2 = arith.cmpi ne, %1, %c0_i32_0 : i32
    scf.if %2 {
      %cst_10 = arith.constant 0.000000e+00 : f32
      %13 = vector.broadcast %cst_10 : f32 to vector<8x64xf32>
      %c0_11 = arith.constant 0 : index
      %c0_12 = arith.constant 0 : index
      %14 = vector.load %arg7[%c0_11, %c0_12] : memref<8x64xf32, #tpu.memory_space<vmem>>, vector<8x64xf32>
      tpu.vector_store %arg7[%c0_11, %c0_12], %13 {strides = array<i32>} : memref<8x64xf32, #tpu.memory_space<vmem>>, vector<8x64xf32>,
    } else {
    }
    %c0 = arith.constant 0 : index
    %c0_1 = arith.constant 0 : index
    %3 = vector.load %arg3[%c0, %c0_1] : memref<8x192xf32, #tpu.memory_space<vmem>>, vector<8x192xf32>
    %c0_2 = arith.constant 0 : index
    %c0_3 = arith.constant 0 : index
    %4 = vector.load %arg7[%c0_2, %c0_3] : memref<8x64xf32, #tpu.memory_space<vmem>>, vector<8x64xf32>
    %5 = arith.truncf %3 : vector<8x192xf32> to vector<8x192xbf16>
    %c0_4 = arith.constant 0 : index
    %c0_5 = arith.constant 0 : index
    %6 = vector.load %arg4[%c0_4, %c0_5] : memref<192x64xbf16, #tpu.memory_space<vmem>>, vector<192x64xbf16>
    %cst = arith.constant dense<0.000000e+00> : vector<8x64xf32>
    %7 = tpu.matmul %5, %6, %cst {dimension_numbers = #tpu.dot_dimension_numbers<[1], [0], [0], [1], [0, 0, 1, 1], [], []>} : vector<8x192xbf16>, vector<192x64xbf16>, vector<8x64xf32> -> vector<8x64xf32>
    %8 = arith.addf %4, %7 : vector<8x64xf32>
    %c0_6 = arith.constant 0 : index
    %c0_7 = arith.constant 0 : index
    %9 = vector.load %arg7[%c0_6, %c0_7] : memref<8x64xf32, #tpu.memory_space<vmem>>, vector<8x64xf32>
    tpu.vector_store %arg7[%c0_6, %c0_7], %8 {strides = array<i32>} : memref<8x64xf32, #tpu.memory_space<vmem>>, vector<8x64xf32>,
    %c0_i32_8 = arith.constant 0 : i32
    %10 = arith.cmpi eq, %arg2, %c0_i32_8 : i32
    %11 = arith.extui %10 : i1 to i32
    %c0_i32_9 = arith.constant 0 : i32
    %12 = arith.cmpi ne, %11, %c0_i32_9 : i32
    scf.if %12 {
      %c0_10 = arith.constant 0 : index
      %c0_11 = arith.constant 0 : index
      %13 = vector.load %arg7[%c0_10, %c0_11] : memref<8x64xf32, #tpu.memory_space<vmem>>, vector<8x64xf32>
      %c0_12 = arith.constant 0 : index
      %c0_13 = arith.constant 0 : index
      %14 = vector.load %arg5[%c0_12, %c0_13] : memref<1x64xf32, #tpu.memory_space<vmem>>, vector<1x64xf32>
      %15 = vector.broadcast %14 : vector<1x64xf32> to vector<8x64xf32>
      %16 = arith.addf %13, %15 : vector<8x64xf32>
      %c0_14 = arith.constant 0 : index
      %c0_15 = arith.constant 0 : index
      %17 = vector.load %arg6[%c0_14, %c0_15] : memref<8x64xf32, #tpu.memory_space<vmem>>, vector<8x64xf32>
      tpu.vector_store %arg6[%c0_14, %c0_15], %16 {strides = array<i32>} : memref<8x64xf32, #tpu.memory_space<vmem>>, vector<8x64xf32>,
    } else {
    }
    return
  }
  func.func @transform_0(%arg0: i32, %arg1: i32, %arg2: i32) -> (i32, i32) {
    %c0_i32 = arith.constant 0 : i32
    return %arg0, %arg2 : i32, i32
  }
  func.func @transform_1(%arg0: i32, %arg1: i32, %arg2: i32) -> (i32, i32) {
    %c0_i32 = arith.constant 0 : i32
    return %arg2, %arg1 : i32, i32
  }
  func.func @transform_2(%arg0: i32, %arg1: i32, %arg2: i32) -> (i32, i32) {
    %c0_i32 = arith.constant 0 : i32
    %c0_i32_0 = arith.constant 0 : i32
    return %c0_i32, %arg1 : i32, i32
  }
  func.func @transform_3(%arg0: i32, %arg1: i32, %arg2: i32) -> (i32, i32) {
    %c0_i32 = arith.constant 0 : i32
    return %arg0, %arg1 : i32, i32
  }
}

</mosaic_0001>

<bundles_post_ra>
// kernel: tpu_custom_call.1
= control target key start
LH: loop header
LB: loop body
LE: loop exit
PB: predicated region body
PF: predicated region fallthrough
CT: control target
= control target key end

     0   :  { %v249_v1 = vmov 0   ;;  %vm20_vm0 = vcmask 523264   ;;  %v250_v3 = vmov 0.0   ;;  %s333_s0 = inlined_call_operand.vmem [shape: f32[8,192], index: 0, kind: input, shape index: {}]   ;;  %s334_s1 = inlined_call_operand.vmem [shape: bf16[192,64], index: 1, kind: input, shape index: {}]   ;;  %s335_s2 = inlined_call_operand.vmem [shape: f32[1,64], index: 2, kind: input, shape index: {}]   ;;  %s336_s3 = inlined_call_operand.hbm [shape: f32[8,64], index: 3, kind: output, shape index: {}]  }
   0x1   :  { %v213_v0 = vld [vmem:[%s334_s1] sm:$0xff]   ;;  %127 = vmatprep.subr.bf16.mxu0 %v249_v1  ;;  %v214_v2 = vld [vmem:[%s334_s1 + $0x8] sm:$0xff]   ;;  %21 = vst.msk [vmem:[#allocation2] sm:$0xff] %vm20_vm0, %v250_v3  ;;  %v215_v4 = vld [vmem:[%s334_s1 + $0x10] sm:$0xff]  }
   0x2   :  { %128 = vmatpush1.bf16.msra.mxu0 %v213_v0  ;;  %v216_v5 = vld [vmem:[%s334_s1 + $0x18] sm:$0xff]   ;;  %v23_v6 = vld [vmem:[%s333_s0 + $0x8] sm:$0xff] }
   0x3   :  { %129 = vmatprep.subr.bf16.mxu0 %v249_v1  ;;  %v26_v7 = vpack.c.bf16 %v23_v6, %v23_v6 }
   0x6   :  { %130 = vmatpush1.bf16.msra.mxu0 %v214_v2 }
   0x7   :  { %131 = vmatprep.subr.bf16.mxu0 %v249_v1 }
   0xa   :  { %132 = vmatpush1.bf16.msra.mxu0 %v215_v4 }
   0xb   :  { %133 = vmatprep.subr.bf16.mxu0 %v249_v1 }
   0xc   :  { %8 = vsyncpa [#allocation4], 0  ;;  %v217_v8 = vld [vmem:[%s334_s1 + $0x20] sm:$0xff]   ;;  %208 = vmatprep.mubr.msk.bf16.mxu0 %vm20_vm0, %v26_v7  ;;  %v218_v9 = vld [vmem:[%s334_s1 + $0x28] sm:$0xff]  }
   0xd   :  { %v219_v10 = vld [vmem:[%s334_s1 + $0x30] sm:$0xff]   ;;  %v220_v11 = vld [vmem:[%s334_s1 + $0x38] sm:$0xff]   ;;  %v221_v12 = vld [vmem:[%s334_s1 + $0x40] sm:$0xff]  }
   0xe   :  { %134 = vmatpush1.bf16.msra.mxu0 %v216_v5  ;;  %v222_v13 = vld [vmem:[%s334_s1 + $0x48] sm:$0xff]   ;;  %v223_v14 = vld [vmem:[%s334_s1 + $0x50] sm:$0xff]   ;;  %v224_v15 = vld [vmem:[%s334_s1 + $0x58] sm:$0xff]   ;;  %s251_s1 = smov [#allocation3]  }
   0xf   :  { %135 = vmatprep.subr.bf16.mxu0 %v249_v1  ;;  %v22_v16 = vld [vmem:[%s333_s0] sm:$0xff]  ;;  %s188_s15 = sshll.u32 %s251_s1, 4  ;;  %s189_s15 = int_to_ptr.vmem [resolvable:$true] %s188_s15 }
  0x10   :  { %v25_v17 = vpack.c.bf16 %v22_v16, %v22_v16  ;;  %v24_v18 = vld [vmem:[#allocation2] sm:$0xff]  ;;  %s225_s0 = scalar_lea.vmem %s189_s15, 128  ;;  %p230_p1 = scmp.lt.s32.totalorder %s189_s15, %s189_s15 }
  0x11   :  { %v209_v24 = vld [vmem:[%s335_s2] ss:$0 sm:$0xff]  ;;  %p226_p0 = scmp.ne.s32.totalorder %s189_s15, %s225_s0  ;;  %p231_p2 = scmp.lt.s32.totalorder %s225_s0, %s225_s0 }
  0x12   :  { %136 = vmatpush1.bf16.msra.mxu0 %v217_v8 }
  0x13   :  { %137 = vmatprep.subr.bf16.mxu0 %v249_v1  ;;  %p232_p3 = por %p231_p2, %p230_p1 }
  0x15   :  { %p233_p4 = pnand %p232_p3, %p226_p0 }
  0x16   :  { %138 = vmatpush1.bf16.msra.mxu0 %v218_v9 }
  0x17   :  { %139 = vmatprep.subr.bf16.mxu0 %v249_v1 }
  0x1a   :  { %140 = vmatpush1.bf16.msra.mxu0 %v219_v10 }
  0x1b   :  { %141 = vmatprep.subr.bf16.mxu0 %v249_v1 }
  0x1e   :  { %142 = vmatpush1.bf16.msra.mxu0 %v220_v11 }
  0x1f   :  { %143 = vmatprep.subr.bf16.mxu0 %v249_v1 }
  0x22   :  { %144 = vmatpush1.bf16.msra.mxu0 %v221_v12 }
  0x23   :  { %145 = vmatprep.subr.bf16.mxu0 %v249_v1 }
  0x26   :  { %146 = vmatpush1.bf16.msra.mxu0 %v222_v13 }
  0x27   :  { %147 = vmatprep.subr.bf16.mxu0 %v249_v1 }
  0x2a   :  { %148 = vmatpush1.bf16.msra.mxu0 %v223_v14 }
  0x2b   :  { %149 = vmatprep.subr.bf16.mxu0 %v249_v1 }
  0x2e   :  { %150 = vmatpush1.bf16.msra.mxu0 %v224_v15 }
  0x31   :  { %160 = vmatmul.mubr.bf16.vlgmr.msra.gmra.mrb[0].mxu0 %v25_v17 }
 0x104   :  { %v161_v19 = vpop.f32.mrb[0].mxu0 }
 0x105   :  { %v167_v20 = vadd.f32 %v161_v19, %v24_v18  ;;  %v163_v21 = vpop.f32.mrb[1].mxu0 }
 0x106   :  { %v164_v22 = vpop.f32.mrb[2].mxu0 }
 0x107   :  { %168 = vst.msk [vmem:[#allocation2] sm:$0xff] %vm20_vm0, %v167_v20  ;;  %v165_v23 = vpop.f32.mrb[3].mxu0 }
 0x10e   :  { %v172_v25 = vld [vmem:[#allocation2] sm:$0xff] }
 0x10f   :  { %v180_v26 = vadd.f32 %v209_v24, %v172_v25 }
 0x111   :  { %181 = vst.msk [vmem:[#allocation3] sm:$0xff] %vm20_vm0, %v180_v26 }
 0x112   :  { %236 = shalt.err (!%p233_p4)
}
 0x113   :  { %s237_s18 = scalar_lea.hbm %s336_s3, 128 }
 0x114   :  { %p238_p5 = scmp.ne.s32.totalorder %s336_s3, %s237_s18  ;;  %p241_p6 = scmp.lt.u32.totalorder %s237_s18, %s336_s3 }
 0x116   :  { %p243_p7 = pnand %p241_p6, %p238_p5 }
 0x118   :  { %246 = shalt.err (!%p243_p7)
}
 0x119   :  { %191 = dma.vmem_to_hbm [thread:$0]  %s189_s15, 128, %s336_s3, [#allocation4]  }
 0x11a   :  { %247 = dma.done.wait [#allocation4], 128  }
 0x11b   :  { %248 = vsyncadd [#allocation4], 4294967168 }
 0x11c   :  { %195 = vsyncpa [#allocation4], 1 }

</bundles_post_ra>
